<compile_context>
chip_gen: v7x
topology: tpu7x:2x2x1
jax: 0.10.0
libtpu: 0.0.40
codegen_flags: <defaults>
</compile_context>

<pallas_src>
import jax
import jax.numpy as jnp
from jax.experimental import pallas as pl
from jax.experimental.pallas import tpu as pltpu


def acnac_kernel(img_ref, num_ref, wimg_ref, wnum_ref, out_ref):
    """Fused actor+critic NAC head.

    img_ref:  (TB, K)    image features in their native storage dtype
    num_ref:  (TB, 1)    obs.numbers in its native storage dtype
    wimg_ref: (K, A+1)   prepared effective weights
    wnum_ref: (1, A+1)   prepared effective weight row for obs.numbers
    out_ref:  (TB, A+1)  [:, :A] = log_softmax(actor logits), [:, A] = value
    """
    a1 = out_ref.shape[-1]
    n_actions = a1 - 1

    # Cast on the VPU inside the kernel (no wrapper-side HBM round-trip for a
    # separate f32 copy of the image).  No-op when inputs are already f32.
    img = img_ref[...].astype(jnp.float32)
    num = num_ref[...].astype(jnp.float32)

    # Single MXU push covering both heads (actor columns + critic column).
    merged = jnp.dot(img, wimg_ref[...].astype(jnp.float32),
                     preferred_element_type=jnp.float32)           # (TB, A+1)
    merged = merged + num * wnum_ref[...].astype(jnp.float32)      # broadcast FMA

    # Masked log_softmax over the first A columns only (column A is the critic
    # value and must not participate in the softmax).
    col = jax.lax.broadcasted_iota(jnp.int32, merged.shape, 1)
    is_logit = col < n_actions
    mmax = jnp.max(jnp.where(is_logit, merged, -jnp.inf), axis=-1, keepdims=True)
    z = merged - mmax
    sumexp = jnp.sum(jnp.where(is_logit, jnp.exp(z), 0.0), axis=-1, keepdims=True)
    log_norm = jnp.log(sumexp)

    out_ref[...] = jnp.where(is_logit, z - log_norm, merged)


def prepare_params(params, image_shape, *, weight_dtype=jnp.float32, mxu_k=128):
    """Hoisted NAC effective-weight construction (once per parameter update).

    Merges actor/critic heads, pre-transposes to (E, A+1), and — when the
    raw flattened image fits one MXU K pass (n*m*C <= 128) — absorbs the
    'take last channel' selection into zero-padded weight rows so the kernel
    can consume the raw NHWC image directly.  Larger images fall back to a
    wrapper-side channel select instead of padding K with zeros.
    """
    n, m, c = image_shape
    im = n * m
    w_hat = jnp.concatenate([params["actor_W_hat"], params["critic_W_hat"]], axis=0)
    m_hat = jnp.concatenate([params["actor_M_hat"], params["critic_M_hat"]], axis=0)
    w_eff = (jnp.tanh(w_hat) * jax.nn.sigmoid(m_hat)).T.astype(weight_dtype)  # (E, A+1)
    a1 = w_eff.shape[1]

    w_img = w_eff[:im]                       # (n*m, A+1) image-feature rows
    w_num = w_eff[im:]                       # (1, A+1)   obs.numbers row

    absorb = (im * c) <= mxu_k
    if absorb:
        # Expand image rows over channels with zeros except channel C-1.
        w_img = (jnp.zeros((im, c, a1), weight_dtype)
                 .at[:, c - 1, :].set(w_img)
                 .reshape(im * c, a1))
    return {"w_img": w_img, "w_num": w_num, "absorb_channels": absorb}


def _round_up(x, mult):
    return -(-x // mult) * mult


def _pick_batch_tile(batch, k_dim, a1, img_itemsize):
    """VMEM-budgeted batch tile.

    Big tiles amortize the ~0.35 us fixed per-grid-step pipeline overhead.
    When the batch is big enough we keep >= 2 `parallel` blocks so v7x's two
    TensorCores both get work (harmless on single-TC v5e/v6e).
    """
    # Double-buffered per-row footprint: image block + numbers + f32 output.
    bytes_per_row = 2 * (k_dim * img_itemsize + 4 + a1 * 4)
    vmem_budget = 8 << 20        # comfortably under every scoped-VMEM default
    tb_max = max(8, min(8192, (vmem_budget // bytes_per_row) // 8 * 8))
    if batch <= tb_max:
        if batch >= 1024:        # worth splitting across 2 TensorCores (v7x)
            return min(tb_max, _round_up(pl.cdiv(batch, 2), 8))
        return batch             # single full-batch block (e.g. tiny eval B)
    return tb_max


def acnac_forward(image, numbers, memory, prepared):
    """Returns (dist_log_probs, value, memory) mirroring ACNACModel.forward."""
    batch = image.shape[0]
    a1 = prepared["w_img"].shape[1]          # n_actions + 1

    # Layout plumbing only — no dtype cast here (cast happens in-kernel).
    if prepared["absorb_channels"]:
        img_flat = image.reshape(batch, -1)              # raw NHWC, contiguous
    else:
        img_flat = image[..., -1].reshape(batch, -1)     # channel-select outside
    k_dim = img_flat.shape[1]
    assert k_dim == prepared["w_img"].shape[0]

    numbers2d = numbers.reshape(batch, 1)

    tb = _pick_batch_tile(batch, k_dim, a1, img_flat.dtype.itemsize)
    grid = (pl.cdiv(batch, tb),)

    out = pl.pallas_call(
        acnac_kernel,
        out_shape=jax.ShapeDtypeStruct((batch, a1), jnp.float32),
        grid=grid,
        in_specs=[
            pl.BlockSpec((tb, k_dim), lambda i: (i, 0)),
            pl.BlockSpec((tb, 1), lambda i: (i, 0)),
            # Constant (0, 0) block index -> weights fetched once and kept
            # VMEM-resident across grid steps (no per-step re-DMA).
            pl.BlockSpec((k_dim, a1), lambda i: (0, 0)),
            pl.BlockSpec((1, a1), lambda i: (0, 0)),
        ],
        out_specs=pl.BlockSpec((tb, a1), lambda i: (i, 0)),
        compiler_params=pltpu.CompilerParams(
            dimension_semantics=("parallel",)),
        cost_estimate=pl.CostEstimate(
            flops=2 * batch * k_dim * a1 + 10 * batch * a1,
            transcendentals=batch * a1,
            bytes_accessed=(batch * k_dim * img_flat.dtype.itemsize
                            + batch * numbers2d.dtype.itemsize
                            + 4 * (k_dim * a1 + a1 + batch * a1))),
    )(img_flat, numbers2d, prepared["w_img"], prepared["w_num"])

    n_actions = a1 - 1
    log_probs = out[:, :n_actions]   # Categorical(logits=log_softmax(...)) logits
    value = out[:, n_actions]        # critic .squeeze(1)
    return log_probs, value, memory


def _reference(image, numbers, params):
    b = image.shape[0]
    x = image[..., -1].reshape(b, -1)
    emb = jnp.concatenate([x, numbers], axis=1).astype(jnp.float32)
    wa = jnp.tanh(params["actor_W_hat"]) * jax.nn.sigmoid(params["actor_M_hat"])
    wc = jnp.tanh(params["critic_W_hat"]) * jax.nn.sigmoid(params["critic_M_hat"])
    logits = emb @ wa.T
    logp = jax.nn.log_softmax(logits, axis=1)
    value = (emb @ wc.T)[:, 0]
    return logp, value


if __name__ == "__main__":
    key = jax.random.PRNGKey(0)
    B, n, m, C = 2, 4, 4, 3          # obs_space['image'] = (n, m, C)
    n_actions = 7                     # action_space.n
    E = n * m + 1                     # embedding_size = semi_memory_size + 1
    mem_size = 2 * n * m              # memory_size (passed through unchanged)

    k = jax.random.split(key, 7)
    # Deterministic kaiming_uniform-style init: U(-sqrt(6/fan_in), sqrt(6/fan_in)).
    bound = (6.0 / E) ** 0.5
    params = {
        "actor_W_hat": jax.random.uniform(k[0], (n_actions, E), jnp.float32, -bound, bound),
        "actor_M_hat": jax.random.uniform(k[1], (n_actions, E), jnp.float32, -bound, bound),
        "critic_W_hat": jax.random.uniform(k[2], (1, E), jnp.float32, -bound, bound),
        "critic_M_hat": jax.random.uniform(k[3], (1, E), jnp.float32, -bound, bound),
    }

    image = jax.random.uniform(k[4], (B, n, m, C), jnp.float32, 0.0, 10.0)
    numbers = jax.random.uniform(k[5], (B, 1), jnp.float32, 0.0, 5.0)
    memory = jnp.zeros((B, mem_size), jnp.float32)

    prepared = prepare_params(params, (n, m, C))   # once per parameter update
    logp, value, mem_out = acnac_forward(image, numbers, memory, prepared)
    jax.block_until_ready((logp, value, mem_out))

    ref_logp, ref_value = _reference(image, numbers, params)
    assert jnp.allclose(logp, ref_logp, atol=1e-5, rtol=1e-5)
    assert jnp.allclose(value, ref_value, atol=1e-5, rtol=1e-5)
    assert jnp.array_equal(mem_out, memory)

    # TODO(synk): torch.distributions.Categorical object construction has no
    # Pallas equivalent; we return its defining log-probs instead.
    print("KERNEL_OK")
</pallas_src>

<mosaic_0001>
module attributes {stable_mosaic.version = 11 : i64} {
  func.func @acnac_kernel(%arg0: i32, %arg1: memref<2x48xf32, #tpu.memory_space<vmem>>, %arg2: memref<2x1xf32, #tpu.memory_space<vmem>>, %arg3: memref<48x8xf32, #tpu.memory_space<vmem>>, %arg4: memref<1x8xf32, #tpu.memory_space<vmem>>, %arg5: memref<2x8xf32, #tpu.memory_space<vmem>>) attributes {dimension_semantics = [#tpu.dimension_semantics<parallel>], iteration_bounds = array<i64: 1>, scalar_prefetch = 0 : i64, scratch_operands = 0 : i64, tpu.core_type = #tpu.core_type<tc>, window_params = [{transform_indices = @transform_0, window_bounds = array<i64: 2, 48>}, {transform_indices = @transform_1, window_bounds = array<i64: 2, 1>}, {pipeline_mode = #tpu.pipeline_mode<synchronous>, transform_indices = @transform_2, window_bounds = array<i64: 48, 8>}, {pipeline_mode = #tpu.pipeline_mode<synchronous>, transform_indices = @transform_3, window_bounds = array<i64: 1, 8>}, {transform_indices = @transform_4, window_bounds = array<i64: 2, 8>}]} {
    %c0 = arith.constant 0 : index
    %c0_0 = arith.constant 0 : index
    %0 = vector.load %arg1[%c0, %c0_0] : memref<2x48xf32, #tpu.memory_space<vmem>>, vector<2x48xf32>
    %c0_1 = arith.constant 0 : index
    %c0_2 = arith.constant 0 : index
    %1 = vector.load %arg2[%c0_1, %c0_2] : memref<2x1xf32, #tpu.memory_space<vmem>>, vector<2x1xf32>
    %c0_3 = arith.constant 0 : index
    %c0_4 = arith.constant 0 : index
    %2 = vector.load %arg3[%c0_3, %c0_4] : memref<48x8xf32, #tpu.memory_space<vmem>>, vector<48x8xf32>
    %cst = arith.constant dense<0.000000e+00> : vector<2x8xf32>
    %3 = tpu.matmul %0, %2, %cst {dimension_numbers = #tpu.dot_dimension_numbers<[1], [0], [0], [1], [0, 0, 1, 1], [], []>} : vector<2x48xf32>, vector<48x8xf32>, vector<2x8xf32> -> vector<2x8xf32>
    %c0_5 = arith.constant 0 : index
    %c0_6 = arith.constant 0 : index
    %4 = vector.load %arg4[%c0_5, %c0_6] : memref<1x8xf32, #tpu.memory_space<vmem>>, vector<1x8xf32>
    %5 = vector.broadcast %1 : vector<2x1xf32> to vector<2x8xf32>
    %6 = vector.broadcast %4 : vector<1x8xf32> to vector<2x8xf32>
    %7 = arith.mulf %5, %6 : vector<2x8xf32>
    %8 = arith.addf %3, %7 : vector<2x8xf32>
    %9 = tpu.iota {dimensions = array<i32: 1>} : vector<2x8xi32>
    %c7_i32 = arith.constant 7 : i32
    %10 = vector.broadcast %c7_i32 : i32 to vector<2x8xi32>
    %11 = arith.cmpi slt, %9, %10 : vector<2x8xi32>
    %cst_7 = arith.constant 0xFF800000 : f32
    %12 = vector.broadcast %cst_7 : f32 to vector<2x8xf32>
    %13 = arith.select %11, %8, %12 : vector<2x8xi1>, vector<2x8xf32>
    %cst_8 = arith.constant dense<0xFF800000> : vector<2xf32>
    %14 = vector.multi_reduction <maximumf>, %13, %cst_8 [1] : vector<2x8xf32> to vector<2xf32>
    %15 = vector.shape_cast %14 : vector<2xf32> to vector<2x1xf32>
    %16 = vector.broadcast %15 : vector<2x1xf32> to vector<2x8xf32>
    %17 = arith.subf %8, %16 : vector<2x8xf32>
    %18 = math.exp %17 : vector<2x8xf32>
    %cst_9 = arith.constant 0.000000e+00 : f32
    %19 = vector.broadcast %cst_9 : f32 to vector<2x8xf32>
    %20 = arith.select %11, %18, %19 : vector<2x8xi1>, vector<2x8xf32>
    %cst_10 = arith.constant dense<0.000000e+00> : vector<2xf32>
    %21 = vector.multi_reduction <add>, %20, %cst_10 [1] : vector<2x8xf32> to vector<2xf32>
    %22 = vector.shape_cast %21 : vector<2xf32> to vector<2x1xf32>
    %23 = math.log %22 : vector<2x1xf32>
    %24 = vector.broadcast %23 : vector<2x1xf32> to vector<2x8xf32>
    %25 = arith.subf %17, %24 : vector<2x8xf32>
    %26 = arith.select %11, %25, %8 : vector<2x8xi1>, vector<2x8xf32>
    %c0_11 = arith.constant 0 : index
    %c0_12 = arith.constant 0 : index
    %27 = vector.load %arg5[%c0_11, %c0_12] : memref<2x8xf32, #tpu.memory_space<vmem>>, vector<2x8xf32>
    tpu.vector_store %arg5[%c0_11, %c0_12], %26 {strides = array<i32>} : memref<2x8xf32, #tpu.memory_space<vmem>>, vector<2x8xf32>,
    return
  }
  func.func @transform_0(%arg0: i32) -> (i32, i32) {
    %c0_i32 = arith.constant 0 : i32
    %c0_i32_0 = arith.constant 0 : i32
    return %arg0, %c0_i32 : i32, i32
  }
  func.func @transform_1(%arg0: i32) -> (i32, i32) {
    %c0_i32 = arith.constant 0 : i32
    %c0_i32_0 = arith.constant 0 : i32
    return %arg0, %c0_i32 : i32, i32
  }
  func.func @transform_2(%arg0: i32) -> (i32, i32) {
    %c0_i32 = arith.constant 0 : i32
    %c0_i32_0 = arith.constant 0 : i32
    %c0_i32_1 = arith.constant 0 : i32
    return %c0_i32, %c0_i32_0 : i32, i32
  }
  func.func @transform_3(%arg0: i32) -> (i32, i32) {
    %c0_i32 = arith.constant 0 : i32
    %c0_i32_0 = arith.constant 0 : i32
    %c0_i32_1 = arith.constant 0 : i32
    return %c0_i32, %c0_i32_0 : i32, i32
  }
  func.func @transform_4(%arg0: i32) -> (i32, i32) {
    %c0_i32 = arith.constant 0 : i32
    %c0_i32_0 = arith.constant 0 : i32
    return %arg0, %c0_i32 : i32, i32
  }
}

</mosaic_0001>

<bundles_post_ra>
// kernel: tpu_custom_call.1
= control target key start
LH: loop header
LB: loop body
LE: loop exit
PB: predicated region body
PF: predicated region fallthrough
CT: control target
= control target key end

     0   :  { %v214_v3 = vmov 0.0|0.0   ;;  %vm215_vm0 = vmmov 0   ;;  %v216_v6 = vmov 0.0   ;;  %v217_v7 = vmov 0   ;;  %s289_s0 = inlined_call_operand.vmem [shape: f32[2,48], index: 0, kind: input, shape index: {}]   ;;  %s290_s1 = inlined_call_operand.vmem [shape: f32[2,1], index: 1, kind: input, shape index: {}]   ;;  %s291_s2 = inlined_call_operand.vmem [shape: f32[48,8], index: 2, kind: input, shape index: {}]   ;;  %s292_s3 = inlined_call_operand.vmem [shape: f32[1,8], index: 3, kind: input, shape index: {}]   ;;  %s293_s4 = inlined_call_operand.hbm [shape: f32[2,8], index: 4, kind: output, shape index: {}]  }
   0x1   :  { %v20_v0 = vld [vmem:[%s291_s2] sm:$0xff]  ;;  %v21_v1 = vld [vmem:[%s291_s2 + $0x8] sm:$0xff]  ;;  %v22_v2 = vld [vmem:[%s291_s2 + $0x10] sm:$0xff]  ;;  %171 = vmatprep.subr.bf16.mxu0 %v214_v3  ;;  %168 = vmatprep.mubr.msk.f32.mxu0 %vm215_vm0, %v216_v6 }
   0x2   :  { %v172_v4 = vpack.c.bf16 %v21_v1, %v20_v0  ;;  %v23_v5 = vld [vmem:[%s291_s2 + $0x18] sm:$0xff]  ;;  %185 = vset.pattern.permute.xlu0 %v217_v7  ;;  %v19_v8 = vld [vmem:[%s290_s1] sm:$0x3] }
   0x3   :  { %v175_v9 = vpack.c.bf16 %v23_v5, %v22_v2  ;;  %29 = vperm.xlu0 %185, %v19_v8  }
   0x4   :  { %173 = vmatpush3.bf16.msra.mxu0 %v172_v4 }
   0x5   :  { %9 = vsyncpa [#allocation3], 0  ;;  %174 = vmatprep.subr.bf16.mxu0 %v214_v3  ;;  %v24_v10 = vld [vmem:[%s291_s2 + $0x20] sm:$0xff]  ;;  %v25_v11 = vld [vmem:[%s291_s2 + $0x28] sm:$0xff]  ;;  %vm39_vm1 = vcmask 392192   ;;  %v113_v14 = vlaneseq  ;;  %vm117_vm3 = vcmask 58368  }
   0x6   :  { %v178_v12 = vpack.c.bf16 %v25_v11, %v24_v10  ;;  %v18_v13 = vld [vmem:[%s289_s0] sm:$0x3]  ;;  %s218_s0 = smov [#allocation2]  }
   0x7   :  { %v147_v15 = vld [vmem:[%s292_s3] ss:$0 sm:$0xff]  ;;  %v114_v17 = vand.u32 127, %v113_v14  ;;  %s139_s2 = sshll.u32 %s218_s0, 4  ;;  %s140_s2 = int_to_ptr.vmem [resolvable:$true] %s139_s2 }
   0x8   :  { %176 = vmatpush3.bf16.msra.mxu0 %v175_v9  ;;  %s190_s3 = scalar_lea.vmem %s140_s2, 32  ;;  %p195_p1 = scmp.lt.s32.totalorder %s140_s2, %s140_s2 }
   0x9   :  { %177 = vmatprep.subr.bf16.mxu0 %v214_v3  ;;  %vm115_vm2 = vcmp.lt.s32.totalorder %v114_v17, 7  ;;  %p191_p0 = scmp.ne.s32.totalorder %s140_s2, %s190_s3  ;;  %p196_p2 = scmp.lt.s32.totalorder %s190_s3, %s190_s3 }
   0xb   :  { %p197_p3 = por %p196_p2, %p195_p1 }
   0xc   :  { %179 = vmatpush3.bf16.msra.mxu0 %v178_v12 }
   0xd   :  { %p198_p4 = pnand %p197_p3, %p191_p0 }
   0xf   :  { %169 = vmatmul.mubr.msk.f32.vlgmr.msra.gmra.mrb[0].mxu0 %vm39_vm1, %v18_v13 }
  0x82   :  { %v30_v16 = vpop.permute.xlu0 %29 }
  0x83   :  { %v38_v18 = vmul.f32 %v147_v15, %v30_v16 }
  0xe2   :  { %v109_v19 = vpop.f32.mrb[0].mxu0 }
  0xe3   :  { %v110_v20 = vadd.f32 %v109_v19, %v38_v18  ;;  %v170_v21 = vpop.f32.mrb[1].mxu0 }
  0xe5   :  { %v116_v22 = vsel %vm115_vm2, %v110_v20, -inf }
  0xe6   :  { %v118_v23 = vsel %vm117_vm3, %v116_v22, -inf }
  0xe7   :  { %119 = vmax.xlane.f32.xlu0 %v118_v23 }
 0x174   :  { %v120_v24 = vpop.xlane.xlu0 %119 }
 0x175   :  { %v121_v25 = vsub.f32 %v110_v20, %v120_v24 }
 0x177   :  { %v122_v26 = vmul.f32 1.442695, %v121_v25 }
 0x179   :  { %186 = vpow2.f32 %v122_v26 }
 0x183   :  { %v187_v27 = vpop.eup %186 }
 0x184   :  { %v124_v28 = vsel %vm115_vm2, %v187_v27, 0.0 }
 0x185   :  { %v125_v29 = vsel %vm117_vm3, %v124_v28, 0.0 }
 0x186   :  { %126 = vadd.xlane.f32.xlu1 %v125_v29 }
 0x213   :  { %v127_v30 = vpop.xlane.xlu1 %126 }
 0x214   :  { %188 = vlog2.f32 %v127_v30 }
 0x21e   :  { %v189_v31 = vpop.eup %188 }
 0x21f   :  { %v129_v32 = vmul.f32 0.6931472, %v189_v31 }
 0x221   :  { %v130_v33 = vsub.f32 %v121_v25, %v129_v32 }
 0x223   :  { %v131_v34 = vsel %vm115_vm2, %v130_v33, %v110_v20 }
 0x224   :  { %132 = vst.msk [vmem:[#allocation2] sm:$0x3] %vm117_vm3, %v131_v34 }
 0x225   :  { %201 = shalt.err (!%p198_p4)
}
 0x226   :  { %s202_s8 = scalar_lea.hbm %s293_s4, 32 }
 0x227   :  { %p203_p5 = scmp.ne.s32.totalorder %s293_s4, %s202_s8  ;;  %p206_p6 = scmp.lt.u32.totalorder %s202_s8, %s293_s4 }
 0x229   :  { %p208_p7 = pnand %p206_p6, %p203_p5 }
 0x22b   :  { %211 = shalt.err (!%p208_p7)
}
 0x22c   :  { %142 = dma.vmem_to_hbm [thread:$0]  %s140_s2, 32, %s293_s4, [#allocation3]  }
 0x22d   :  { %212 = dma.done.wait [#allocation3], 32  }
 0x22e   :  { %213 = vsyncadd [#allocation3], 4294967264 }
 0x22f   :  { %146 = vsyncpa [#allocation3], 1 }

</bundles_post_ra>
